<compile_context>
chip_gen: v7x
topology: tpu7x:2x2x1
jax: 0.10.0
libtpu: 0.0.40
codegen_flags: <defaults>
</compile_context>

<pallas_src>
import functools

import jax
import jax.numpy as jnp
from jax.experimental import pallas as pl
from jax.experimental.pallas import tpu as pltpu


def _round_up(x, m):
    return ((x + m - 1) // m) * m


def _ensemble_kernel(num_ensemble,
                     x_ref, w1_ref, b1_ref, w2_ref, b2_ref, w3t_ref, b3_ref,
                     out_ref):
    """One batch tile of the whole ensemble, fused along the lane axis.

    x_ref  : (TB, D)
    w1_ref : (D, EHp)                      b1_ref: (1, EHp)
    w2_ref : (EHp, EHp) block-diagonal     b2_ref: (1, EHp)
    w3t_ref: (E, EHp)   block-diag, pre-transposed
    b3_ref : (E, 1)
    out_ref: (2, TB)    row 0 = mean, row 1 = var (unbiased, N-1)
    """
    x = x_ref[...]

    # Layer 1: all E members in one MXU pass (output lanes = E*H, zero-padded
    # to a 128 multiple -> no ragged-lane work).
    h1 = jnp.dot(x, w1_ref[...], preferred_element_type=jnp.float32)
    h1 = jnp.maximum(h1 + b1_ref[...], 0.0)
    # TODO(synk): nn.Dropout is eval-mode identity here (no training-mode mask).

    # Layer 2: one block-diagonal MXU pass; off-diagonal zeros are padding only.
    h2 = jnp.dot(h1, w2_ref[...], preferred_element_type=jnp.float32)
    h2 = jnp.maximum(h2 + b2_ref[...], 0.0)

    # Layer 3 computed directly in transposed (E, TB) orientation with a
    # contract-last-with-last MXU pass, so the (2, TB) lane-dense output can
    # be built with a plain sublane reduction + concat (no transpose op).
    p_t = jnp.einsum('ek,bk->eb', w3t_ref[...], h2,
                     preferred_element_type=jnp.float32)       # (E, TB)
    p_t = p_t + b3_ref[...]                                    # (E, 1) bcast

    # torch: mean(dim=1, keepdim=True) and unbiased var(dim=1, keepdim=True),
    # here along the sublane (ensemble) axis.
    mean = jnp.sum(p_t, axis=0, keepdims=True) * (1.0 / num_ensemble)  # (1,TB)
    centered = p_t - mean
    var = jnp.sum(centered * centered, axis=0, keepdims=True) * (
        1.0 / (num_ensemble - 1))                                       # (1,TB)

    out_ref[...] = jnp.concatenate([mean, var], axis=0).astype(out_ref.dtype)


def _block_diag(blocks):
    """Stack 2-D blocks along the diagonal (zeros elsewhere)."""
    r, c = blocks[0].shape
    n = len(blocks)
    out = jnp.zeros((n * r, n * c), blocks[0].dtype)
    for e, blk in enumerate(blocks):
        out = out.at[e * r:(e + 1) * r, e * c:(e + 1) * c].set(blk)
    return out


def fuse_ensemble_params(params, lane_multiple=128):
    """One-time weight prep: fuse the ensemble dim into the lane axis.

    E*H is zero-padded to a multiple of `lane_multiple`; the padded hidden
    units stay exactly 0 through both ReLUs and never touch the output.
    """
    E, D, H = params["w1"].shape
    EH = E * H
    EHp = max(_round_up(EH, lane_multiple), lane_multiple)
    pad = EHp - EH

    w1 = jnp.transpose(params["w1"], (1, 0, 2)).reshape(D, EH)   # (D, E*H)
    w2 = _block_diag([params["w2"][e] for e in range(E)])        # (E*H, E*H)
    w3 = _block_diag([params["w3"][e] for e in range(E)])        # (E*H, E)

    return {
        "num_ensemble": E,
        "w1": jnp.pad(w1, ((0, 0), (0, pad))),                       # (D, EHp)
        "b1": jnp.pad(params["b1"].reshape(1, EH), ((0, 0), (0, pad))),
        "w2": jnp.pad(w2, ((0, pad), (0, pad))),                     # (EHp,EHp)
        "b2": jnp.pad(params["b2"].reshape(1, EH), ((0, 0), (0, pad))),
        # Pre-transposed so layer 3 runs as 'ek,bk->eb'.
        "w3t": jnp.pad(w3.T, ((0, 0), (0, pad))),                    # (E, EHp)
        "b3": params["b3"].reshape(E, 1),                            # (E, 1)
    }


def _choose_batch_tile(B):
    """Big tiles amortize the ~0.35 us per-grid-step cost; keep >= 2 steps
    when B is large so the 'parallel' axis shards across v7x's two TCs."""
    if B <= 256:
        return B                               # one step; block == array dims
    return min(2048, _round_up(pl.cdiv(B, 2), 128))


def ensemble_predictor_forward(x, fused):
    """Returns (mean, var), each (B, 1), matching torch keepdim=True."""
    B, D = x.shape
    E = fused["num_ensemble"]
    if E < 2:
        raise ValueError("num_ensemble must be >= 2 for an unbiased variance.")
    EHp = fused["w1"].shape[1]

    TB = _choose_batch_tile(B)
    nb = pl.cdiv(B, TB)

    # Loop-invariant blocks: single-buffered (index_map is constant).
    weight_mode = pl.Buffered(1)

    flops = 2 * B * (D * EHp + EHp * EHp + EHp * E)
    bytes_accessed = 4 * (B * D + D * EHp + EHp * EHp + E * EHp
                          + 2 * EHp + E + 2 * B)

    # Size the scoped-VMEM limit from the actual buffers (x/out double-buffered,
    # weights single-buffered, plus live intermediates), with headroom; clamp
    # to stay well under v7x's 64 MiB physical VMEM.
    vmem_bytes = 4 * (2 * TB * D + 2 * 2 * TB
                      + D * EHp + EHp * EHp + E * EHp + 2 * EHp + E
                      + 3 * TB * EHp + 2 * E * TB)
    vmem_limit = int(min(max(2 * vmem_bytes, 32 * 1024 * 1024),
                         48 * 1024 * 1024))

    kernel = functools.partial(_ensemble_kernel, E)
    out = pl.pallas_call(
        kernel,
        out_shape=jax.ShapeDtypeStruct((2, B), jnp.float32),
        grid_spec=pltpu.PrefetchScalarGridSpec(
            num_scalar_prefetch=0,
            grid=(nb,),
            in_specs=[
                pl.BlockSpec((TB, D), lambda i: (i, 0)),      # x tile
                pl.BlockSpec((D, EHp), lambda i: (0, 0),
                             pipeline_mode=weight_mode),      # w1
                pl.BlockSpec((1, EHp), lambda i: (0, 0),
                             pipeline_mode=weight_mode),      # b1
                pl.BlockSpec((EHp, EHp), lambda i: (0, 0),
                             pipeline_mode=weight_mode),      # w2 (block-diag)
                pl.BlockSpec((1, EHp), lambda i: (0, 0),
                             pipeline_mode=weight_mode),      # b2
                pl.BlockSpec((E, EHp), lambda i: (0, 0),
                             pipeline_mode=weight_mode),      # w3^T (block-diag)
                pl.BlockSpec((E, 1), lambda i: (0, 0),
                             pipeline_mode=weight_mode),      # b3
            ],
            out_specs=pl.BlockSpec((2, TB), lambda i: (0, i)),
        ),
        compiler_params=pltpu.CompilerParams(
            dimension_semantics=("parallel",),
            vmem_limit_bytes=vmem_limit),
        cost_estimate=pl.CostEstimate(flops=flops, transcendentals=0,
                                      bytes_accessed=bytes_accessed),
    )(x, fused["w1"], fused["b1"], fused["w2"], fused["b2"],
      fused["w3t"], fused["b3"])

    mean = out[0][:, None]
    var = out[1][:, None]
    return mean, var


def init_params(key, input_size, hidden_size, num_ensemble):
    """Deterministic synthetic weights (shapes match the torch module)."""
    ks = jax.random.split(key, 6)
    scale1 = 1.0 / jnp.sqrt(input_size)
    scale2 = 1.0 / jnp.sqrt(hidden_size)
    return {
        "w1": jax.random.uniform(ks[0], (num_ensemble, input_size, hidden_size),
                                 jnp.float32, -scale1, scale1),
        "b1": jax.random.uniform(ks[1], (num_ensemble, hidden_size),
                                 jnp.float32, -scale1, scale1),
        "w2": jax.random.uniform(ks[2], (num_ensemble, hidden_size, hidden_size),
                                 jnp.float32, -scale2, scale2),
        "b2": jax.random.uniform(ks[3], (num_ensemble, hidden_size),
                                 jnp.float32, -scale2, scale2),
        "w3": jax.random.uniform(ks[4], (num_ensemble, hidden_size, 1),
                                 jnp.float32, -scale2, scale2),
        "b3": jax.random.uniform(ks[5], (num_ensemble, 1),
                                 jnp.float32, -scale2, scale2),
    }


def _reference_forward(x, params):
    """Pure-JAX reference mirroring the torch module (eval mode, unfused)."""
    preds = []
    E = params["w1"].shape[0]
    for e in range(E):
        h1 = jnp.maximum(x @ params["w1"][e] + params["b1"][e], 0.0)
        h2 = jnp.maximum(h1 @ params["w2"][e] + params["b2"][e], 0.0)
        preds.append(h2 @ params["w3"][e] + params["b3"][e])
    P = jnp.concatenate(preds, axis=1)                      # (B, E)
    mean = jnp.mean(P, axis=1, keepdims=True)
    var = jnp.sum((P - mean) ** 2, axis=1, keepdims=True) / (E - 1)
    return mean, var


if __name__ == "__main__":
    B, INPUT_SIZE, HIDDEN_SIZE, NUM_ENSEMBLE = 8, 16, 32, 5

    key = jax.random.PRNGKey(0)
    k_x, k_p = jax.random.split(key)
    x = jax.random.normal(k_x, (B, INPUT_SIZE), jnp.float32)
    params = init_params(k_p, INPUT_SIZE, HIDDEN_SIZE, NUM_ENSEMBLE)
    fused = fuse_ensemble_params(params)

    mean, var = ensemble_predictor_forward(x, fused)
    jax.block_until_ready((mean, var))

    ref_mean, ref_var = _reference_forward(x, params)
    assert mean.shape == (B, 1) and var.shape == (B, 1)
    assert jnp.allclose(mean, ref_mean, atol=1e-5, rtol=1e-5)
    assert jnp.allclose(var, ref_var, atol=1e-5, rtol=1e-5)

    print("KERNEL_OK")
</pallas_src>

<mosaic_0001>
module attributes {stable_mosaic.version = 11 : i64} {
  func.func @_ensemble_kernel(%arg0: i32, %arg1: memref<8x16xf32, #tpu.memory_space<vmem>>, %arg2: memref<16x256xf32, #tpu.memory_space<vmem>>, %arg3: memref<1x256xf32, #tpu.memory_space<vmem>>, %arg4: memref<256x256xf32, #tpu.memory_space<vmem>>, %arg5: memref<1x256xf32, #tpu.memory_space<vmem>>, %arg6: memref<5x256xf32, #tpu.memory_space<vmem>>, %arg7: memref<5x1xf32, #tpu.memory_space<vmem>>, %arg8: memref<2x8xf32, #tpu.memory_space<vmem>>) attributes {dimension_semantics = [#tpu.dimension_semantics<parallel>], iteration_bounds = array<i64: 1>, scalar_prefetch = 0 : i64, scratch_operands = 0 : i64, tpu.core_type = #tpu.core_type<tc>, window_params = [{transform_indices = @transform_0, window_bounds = array<i64: 8, 16>}, {pipeline_mode = #tpu.pipeline_mode<synchronous>, transform_indices = @transform_1, window_bounds = array<i64: 16, 256>}, {pipeline_mode = #tpu.pipeline_mode<synchronous>, transform_indices = @transform_2, window_bounds = array<i64: 1, 256>}, {pipeline_mode = #tpu.pipeline_mode<synchronous>, transform_indices = @transform_3, window_bounds = array<i64: 256, 256>}, {pipeline_mode = #tpu.pipeline_mode<synchronous>, transform_indices = @transform_4, window_bounds = array<i64: 1, 256>}, {pipeline_mode = #tpu.pipeline_mode<synchronous>, transform_indices = @transform_5, window_bounds = array<i64: 5, 256>}, {pipeline_mode = #tpu.pipeline_mode<synchronous>, transform_indices = @transform_6, window_bounds = array<i64: 5, 1>}, {transform_indices = @transform_7, window_bounds = array<i64: 2, 8>}]} {
    %c0 = arith.constant 0 : index
    %c0_0 = arith.constant 0 : index
    %0 = vector.load %arg1[%c0, %c0_0] : memref<8x16xf32, #tpu.memory_space<vmem>>, vector<8x16xf32>
    %c0_1 = arith.constant 0 : index
    %c0_2 = arith.constant 0 : index
    %1 = vector.load %arg2[%c0_1, %c0_2] : memref<16x256xf32, #tpu.memory_space<vmem>>, vector<16x256xf32>
    %cst = arith.constant dense<0.000000e+00> : vector<8x256xf32>
    %2 = tpu.matmul %0, %1, %cst {dimension_numbers = #tpu.dot_dimension_numbers<[1], [0], [0], [1], [0, 0, 1, 1], [], []>} : vector<8x16xf32>, vector<16x256xf32>, vector<8x256xf32> -> vector<8x256xf32>
    %c0_3 = arith.constant 0 : index
    %c0_4 = arith.constant 0 : index
    %3 = vector.load %arg3[%c0_3, %c0_4] : memref<1x256xf32, #tpu.memory_space<vmem>>, vector<1x256xf32>
    %4 = vector.broadcast %3 : vector<1x256xf32> to vector<8x256xf32>
    %5 = arith.addf %2, %4 : vector<8x256xf32>
    %cst_5 = arith.constant 0.000000e+00 : f32
    %6 = vector.broadcast %cst_5 : f32 to vector<8x256xf32>
    %7 = arith.maximumf %5, %6 : vector<8x256xf32>
    %c0_6 = arith.constant 0 : index
    %c0_7 = arith.constant 0 : index
    %8 = vector.load %arg4[%c0_6, %c0_7] : memref<256x256xf32, #tpu.memory_space<vmem>>, vector<256x256xf32>
    %cst_8 = arith.constant dense<0.000000e+00> : vector<8x256xf32>
    %9 = tpu.matmul %7, %8, %cst_8 {dimension_numbers = #tpu.dot_dimension_numbers<[1], [0], [0], [1], [0, 0, 1, 1], [], []>} : vector<8x256xf32>, vector<256x256xf32>, vector<8x256xf32> -> vector<8x256xf32>
    %c0_9 = arith.constant 0 : index
    %c0_10 = arith.constant 0 : index
    %10 = vector.load %arg5[%c0_9, %c0_10] : memref<1x256xf32, #tpu.memory_space<vmem>>, vector<1x256xf32>
    %11 = vector.broadcast %10 : vector<1x256xf32> to vector<8x256xf32>
    %12 = arith.addf %9, %11 : vector<8x256xf32>
    %cst_11 = arith.constant 0.000000e+00 : f32
    %13 = vector.broadcast %cst_11 : f32 to vector<8x256xf32>
    %14 = arith.maximumf %12, %13 : vector<8x256xf32>
    %c0_12 = arith.constant 0 : index
    %c0_13 = arith.constant 0 : index
    %15 = vector.load %arg6[%c0_12, %c0_13] : memref<5x256xf32, #tpu.memory_space<vmem>>, vector<5x256xf32>
    "tpu.trace_start"() <{level = 10 : i32, message = "ek,bk->eb"}> : () -> ()
    %cst_14 = arith.constant dense<0.000000e+00> : vector<5x8xf32>
    %16 = tpu.matmul %15, %14, %cst_14 {dimension_numbers = #tpu.dot_dimension_numbers<[1], [1], [0], [0], [0, 0, 1, 0], [], []>} : vector<5x256xf32>, vector<8x256xf32>, vector<5x8xf32> -> vector<5x8xf32>
    "tpu.trace_stop"() : () -> ()
    %c0_15 = arith.constant 0 : index
    %c0_16 = arith.constant 0 : index
    %17 = vector.load %arg7[%c0_15, %c0_16] : memref<5x1xf32, #tpu.memory_space<vmem>>, vector<5x1xf32>
    %18 = vector.broadcast %17 : vector<5x1xf32> to vector<5x8xf32>
    %19 = arith.addf %16, %18 : vector<5x8xf32>
    %cst_17 = arith.constant dense<0.000000e+00> : vector<8xf32>
    %20 = vector.multi_reduction <add>, %19, %cst_17 [0] : vector<5x8xf32> to vector<8xf32>
    %21 = vector.shape_cast %20 : vector<8xf32> to vector<1x8xf32>
    %cst_18 = arith.constant 2.000000e-01 : f32
    %22 = vector.broadcast %cst_18 : f32 to vector<1x8xf32>
    %23 = arith.mulf %21, %22 : vector<1x8xf32>
    %24 = vector.broadcast %23 : vector<1x8xf32> to vector<5x8xf32>
    %25 = arith.subf %19, %24 : vector<5x8xf32>
    %26 = arith.mulf %25, %25 : vector<5x8xf32>
    %cst_19 = arith.constant dense<0.000000e+00> : vector<8xf32>
    %27 = vector.multi_reduction <add>, %26, %cst_19 [0] : vector<5x8xf32> to vector<8xf32>
    %28 = vector.shape_cast %27 : vector<8xf32> to vector<1x8xf32>
    %cst_20 = arith.constant 2.500000e-01 : f32
    %29 = vector.broadcast %cst_20 : f32 to vector<1x8xf32>
    %30 = arith.mulf %28, %29 : vector<1x8xf32>
    %31 = tpu.concatenate %23, %30 in 0 : vector<1x8xf32>, vector<1x8xf32> -> vector<2x8xf32>
    %c0_21 = arith.constant 0 : index
    %c0_22 = arith.constant 0 : index
    %32 = vector.load %arg8[%c0_21, %c0_22] : memref<2x8xf32, #tpu.memory_space<vmem>>, vector<2x8xf32>
    tpu.vector_store %arg8[%c0_21, %c0_22], %31 {strides = array<i32>} : memref<2x8xf32, #tpu.memory_space<vmem>>, vector<2x8xf32>,
    return
  }
  func.func @transform_0(%arg0: i32) -> (i32, i32) {
    %c0_i32 = arith.constant 0 : i32
    %c0_i32_0 = arith.constant 0 : i32
    return %arg0, %c0_i32 : i32, i32
  }
  func.func @transform_1(%arg0: i32) -> (i32, i32) {
    %c0_i32 = arith.constant 0 : i32
    %c0_i32_0 = arith.constant 0 : i32
    %c0_i32_1 = arith.constant 0 : i32
    return %c0_i32, %c0_i32_0 : i32, i32
  }
  func.func @transform_2(%arg0: i32) -> (i32, i32) {
    %c0_i32 = arith.constant 0 : i32
    %c0_i32_0 = arith.constant 0 : i32
    %c0_i32_1 = arith.constant 0 : i32
    return %c0_i32, %c0_i32_0 : i32, i32
  }
  func.func @transform_3(%arg0: i32) -> (i32, i32) {
    %c0_i32 = arith.constant 0 : i32
    %c0_i32_0 = arith.constant 0 : i32
    %c0_i32_1 = arith.constant 0 : i32
    return %c0_i32, %c0_i32_0 : i32, i32
  }
  func.func @transform_4(%arg0: i32) -> (i32, i32) {
    %c0_i32 = arith.constant 0 : i32
    %c0_i32_0 = arith.constant 0 : i32
    %c0_i32_1 = arith.constant 0 : i32
    return %c0_i32, %c0_i32_0 : i32, i32
  }
  func.func @transform_5(%arg0: i32) -> (i32, i32) {
    %c0_i32 = arith.constant 0 : i32
    %c0_i32_0 = arith.constant 0 : i32
    %c0_i32_1 = arith.constant 0 : i32
    return %c0_i32, %c0_i32_0 : i32, i32
  }
  func.func @transform_6(%arg0: i32) -> (i32, i32) {
    %c0_i32 = arith.constant 0 : i32
    %c0_i32_0 = arith.constant 0 : i32
    %c0_i32_1 = arith.constant 0 : i32
    return %c0_i32, %c0_i32_0 : i32, i32
  }
  func.func @transform_7(%arg0: i32) -> (i32, i32) {
    %c0_i32 = arith.constant 0 : i32
    %c0_i32_0 = arith.constant 0 : i32
    return %c0_i32, %arg0 : i32, i32
  }
}

</mosaic_0001>

<bundles_post_ra>
// kernel: tpu_custom_call.1
= control target key start
LH: loop header
LB: loop body
LE: loop exit
PB: predicated region body
PF: predicated region fallthrough
CT: control target
= control target key end

     0   :  { %12 = vsyncpa [#allocation3], 0  ;;  %s716_s0 = inlined_call_operand.vmem [shape: f32[8,16], index: 0, kind: input, shape index: {}]   ;;  %s717_s1 = inlined_call_operand.hbm [shape: f32[16,256], index: 1, kind: input, shape index: {}]   ;;  %s718_s2 = inlined_call_operand.vmem [shape: f32[1,256], index: 2, kind: input, shape index: {}]   ;;  %s719_s3 = inlined_call_operand.hbm [shape: f32[256,256], index: 3, kind: input, shape index: {}]   ;;  %s720_s4 = inlined_call_operand.hbm [shape: f32[1,256], index: 4, kind: input, shape index: {}]   ;;  %s721_s5 = inlined_call_operand.vmem [shape: f32[5,256], index: 5, kind: input, shape index: {}]   ;;  %s722_s6 = inlined_call_operand.vmem [shape: f32[5,1], index: 6, kind: input, shape index: {}]   ;;  %s723_s7 = inlined_call_operand.hbm [shape: f32[2,8], index: 7, kind: output, shape index: {}]  }
   0x1   :  { %13 = vsyncpa [#allocation6], 0 }
   0x2   :  { %14 = vsyncpa [#allocation4], 0  ;;  %s598_s24 = smov [#allocation5]   ;;  %s599_s26 = smov [#allocation2]  }
   0x3   :  { %s36_s25 = sshll.u32 %s598_s24, 4  ;;  %s22_s27 = sshll.u32 %s599_s26, 4  ;;  %s37_s25 = int_to_ptr.vmem [resolvable:$true] %s36_s25  ;;  %s646_s27 = int_to_ptr.vmem [resolvable:$true] %s22_s27 }
   0x4   :  { %s504_s30 = scalar_lea.hbm %s719_s3, 8192 }
   0x5   :  { %p505_p0 = scmp.ne.s32.totalorder %s719_s3, %s504_s30  ;;  %p508_p1 = scmp.lt.u32.totalorder %s504_s30, %s719_s3 }
   0x7   :  { %p510_p2 = pnand %p508_p1, %p505_p0 }
   0x9   :  { %513 = shalt.err (!%p510_p2)
}
   0xa   :  { %s514_s12 = scalar_lea.vmem %s37_s25, 8192  ;;  %p519_p4 = scmp.lt.s32.totalorder %s37_s25, %s37_s25 }
   0xb   :  { %p515_p3 = scmp.ne.s32.totalorder %s37_s25, %s514_s12  ;;  %p520_p5 = scmp.lt.s32.totalorder %s514_s12, %s514_s12 }
   0xd   :  { %p521_p6 = por %p520_p5, %p519_p4 }
   0xf   :  { %p522_p7 = pnand %p521_p6, %p515_p3 }
  0x11   :  { %525 = shalt.err (!%p522_p7)
}
  0x12   :  { %s600_s13 = smov 256   ;;  %s601_s14 = smov 16  }
  0x13   :  { %42 = dma.hbm_to_vmem [thread:$0]  %s719_s3, 8192, %s37_s25, [#allocation6], %s600_s13, %s600_s13, %s601_s14  }
  0x14   :  { %s526_s19 = scalar_lea.hbm %s717_s1, 512 }
  0x15   :  { %p527_p8 = scmp.ne.s32.totalorder %s717_s1, %s526_s19  ;;  %p530_p9 = scmp.lt.u32.totalorder %s526_s19, %s717_s1 }
  0x17   :  { %p532_p10 = pnand %p530_p9, %p527_p8 }
  0x19   :  { %535 = shalt.err (!%p532_p10)
}
  0x1a   :  { %s536_s24 = scalar_lea.vmem %s646_s27, 512  ;;  %p541_p12 = scmp.lt.s32.totalorder %s646_s27, %s646_s27 }
  0x1b   :  { %p537_p11 = scmp.ne.s32.totalorder %s646_s27, %s536_s24  ;;  %p542_p13 = scmp.lt.s32.totalorder %s536_s24, %s536_s24 }
  0x1d   :  { %p543_p0 = por %p542_p13, %p541_p12 }
  0x1f   :  { %p544_p1 = pnand %p543_p0, %p537_p11 }
  0x21   :  { %547 = shalt.err (!%p544_p1)
}
  0x22   :  { %28 = dma.hbm_to_vmem [thread:$0]  %s717_s1, 512, %s646_s27, [#allocation3], %s600_s13, %s600_s13, %s601_s14  }
  0x23   :  { %s602_s26 = smov [#allocation7]   ;;  %s548_s8 = scalar_lea.hbm %s720_s4, 32 }
  0x24   :  { %s49_s28 = sshll.u32 %s602_s26, 4  ;;  %p549_p2 = scmp.ne.s32.totalorder %s720_s4, %s548_s8  ;;  %s50_s28 = int_to_ptr.vmem [resolvable:$true] %s49_s28 }
  0x25   :  { %p552_p3 = scmp.lt.u32.totalorder %s548_s8, %s720_s4 }
  0x27   :  { %p554_p4 = pnand %p552_p3, %p549_p2 }
  0x29   :  { %557 = shalt.err (!%p554_p4)
}
  0x2a   :  { %s558_s15 = scalar_lea.vmem %s50_s28, 32  ;;  %p563_p6 = scmp.lt.s32.totalorder %s50_s28, %s50_s28 }
  0x2b   :  { %p559_p5 = scmp.ne.s32.totalorder %s50_s28, %s558_s15  ;;  %p564_p7 = scmp.lt.s32.totalorder %s558_s15, %s558_s15 }
  0x2d   :  { %p565_p8 = por %p564_p7, %p563_p6 }
  0x2f   :  { %p566_p9 = pnand %p565_p8, %p559_p5 }
  0x31   :  { %569 = shalt.err (!%p566_p9)
}
  0x32   :  { %52 = dma.hbm_to_vmem [thread:$0]  %s720_s4, 32, %s50_s28, [#allocation6]  }
  0x33   :  { %592 = dma.done.wait [#allocation3], 512  }
  0x34   :  { %593 = vsyncadd [#allocation3], 4294966784 }
  0x35   :  { %594 = dma.done.wait [#allocation6], 8224  }
  0x36   :  { %595 = vsyncadd [#allocation6], 4294959072  ;;  %v603_v0 = vmov 0.0   ;;  %v68_v1 = vld [vmem:[#allocation2 + $0x8] sm:$0xff]  ;;  %v70_v2 = vld [vmem:[#allocation2 + $0x18] sm:$0xff]  ;;  %vm83_vm0 = vcmask 130048  }
  0x37   :  { %151 = vmatprep.mubr.f32.mxu0 %v603_v0  ;;  %v67_v3 = vld [vmem:[#allocation2] sm:$0xff]  ;;  %v427_v4 = vpack.c.bf16 %v70_v2, %v68_v1  ;;  %v69_v5 = vld [vmem:[#allocation2 + $0x10] sm:$0xff]  ;;  %v161_v6 = vld [vmem:[#allocation5 + $0x8] sm:$0xff]  ;;  %vm387_vm1 = vcmask 61440   ;;  %vm406_vm2 = vcmask 1040384   ;;  %vm408_vm3 = vcmask 58368  }
  0x38   :  { %v429_v7 = vpack.c.bf16 %v69_v5, %v67_v3  ;;  %v66_v8 = vld [vmem:[%s716_s0] sm:$0xff]  ;;  %v163_v9 = vld [vmem:[#allocation5 + $0x18] sm:$0xff]  ;;  %v162_v11 = vld [vmem:[#allocation5 + $0x10] sm:$0xff] }
  0x39   :  { %v160_v10 = vld [vmem:[#allocation5] sm:$0xff]  ;;  %428 = vmatprep.subr.bf16.mxu0 %v427_v4  ;;  %v431_v12 = vpack.c.bf16 %v163_v9, %v161_v6  ;;  %v165_v14 = vld [vmem:[#allocation5 + $0x28] sm:$0xff]  ;;  %v167_v15 = vld [vmem:[#allocation5 + $0x38] sm:$0xff] }
  0x3a   :  { %v433_v13 = vpack.c.bf16 %v162_v11, %v160_v10  ;;  %v164_v16 = vld [vmem:[#allocation5 + $0x20] sm:$0xff]  ;;  %430 = vmatpush1.bf16.msra.mxu0 %v429_v7  ;;  %v435_v17 = vpack.c.bf16 %v167_v15, %v165_v14  ;;  %v166_v18 = vld [vmem:[#allocation5 + $0x30] sm:$0xff]  ;;  %v169_v19 = vld [vmem:[#allocation5 + $0x48] sm:$0xff] }
  0x3b   :  { %v171_v20 = vld [vmem:[#allocation5 + $0x58] sm:$0xff]  ;;  %432 = vmatprep.subr.bf16.mxu1 %v431_v12  ;;  %v437_v21 = vpack.c.bf16 %v166_v18, %v164_v16  ;;  %v168_v23 = vld [vmem:[#allocation5 + $0x40] sm:$0xff]  ;;  %v170_v24 = vld [vmem:[#allocation5 + $0x50] sm:$0xff] }
  0x3c   :  { %434 = vmatpush1.bf16.msra.mxu1 %v433_v13  ;;  %v439_v22 = vpack.c.bf16 %v171_v20, %v169_v19  ;;  %v173_v25 = vld [vmem:[#allocation5 + $0x68] sm:$0xff]  ;;  %v175_v26 = vld [vmem:[#allocation5 + $0x78] sm:$0xff]  ;;  %v441_v27 = vpack.c.bf16 %v170_v24, %v168_v23  ;;  %v172_v29 = vld [vmem:[#allocation5 + $0x60] sm:$0xff] }
  0x3d   :  { %426 = vmatmul.mubr.msk.f32.vlgmr.msra.gmra.mrb[0].mxu0 %vm83_vm0, %v66_v8  ;;  %436 = vmatprep.subr.bf16.mxu1 %v435_v17  ;;  %v443_v28 = vpack.c.bf16 %v175_v26, %v173_v25  ;;  %v174_v30 = vld [vmem:[#allocation5 + $0x70] sm:$0xff]  ;;  %v177_v31 = vld [vmem:[#allocation5 + $0x88] sm:$0xff]  ;;  %v179_v32 = vld [vmem:[#allocation5 + $0x98] sm:$0xff] }
  0x3e   :  { %v445_v33 = vpack.c.bf16 %v174_v30, %v172_v29  ;;  %v447_v34 = vpack.c.bf16 %v179_v32, %v177_v31  ;;  %v176_v35 = vld [vmem:[#allocation5 + $0x80] sm:$0xff]  ;;  %v178_v36 = vld [vmem:[#allocation5 + $0x90] sm:$0xff]  ;;  %v181_v37 = vld [vmem:[#allocation5 + $0xa8] sm:$0xff] }
  0x3f   :  { %v183_v38 = vld [vmem:[#allocation5 + $0xb8] sm:$0xff]  ;;  %v449_v39 = vpack.c.bf16 %v178_v36, %v176_v35  ;;  %v180_v41 = vld [vmem:[#allocation5 + $0xa0] sm:$0xff]  ;;  %v182_v42 = vld [vmem:[#allocation5 + $0xb0] sm:$0xff] }
  0x40   :  { %438 = vmatpush1.bf16.msra.mxu1 %v437_v21  ;;  %v451_v40 = vpack.c.bf16 %v183_v38, %v181_v37  ;;  %v185_v43 = vld [vmem:[#allocation5 + $0xc8] sm:$0xff]  ;;  %v187_v44 = vld [vmem:[#allocation5 + $0xd8] sm:$0xff]  ;;  %v453_v45 = vpack.c.bf16 %v182_v42, %v180_v41  ;;  %v184_v47 = vld [vmem:[#allocation5 + $0xc0] sm:$0xff] }
  0x41   :  { %440 = vmatprep.subr.bf16.mxu1 %v439_v22  ;;  %v455_v46 = vpack.c.bf16 %v187_v44, %v185_v43  ;;  %v186_v48 = vld [vmem:[#allocation5 + $0xd0] sm:$0xff]  ;;  %v189_v49 = vld [vmem:[#allocation5 + $0xe8] sm:$0xff]  ;;  %v191_v50 = vld [vmem:[#allocation5 + $0xf8] sm:$0xff] }
  0x42   :  { %v457_v51 = vpack.c.bf16 %v186_v48, %v184_v47  ;;  %v459_v52 = vpack.c.bf16 %v191_v50, %v189_v49  ;;  %v188_v53 = vld [vmem:[#allocation5 + $0xe0] sm:$0xff]  ;;  %v190_v54 = vld [vmem:[#allocation5 + $0xf0] sm:$0xff]  ;;  %v193_v55 = vld [vmem:[#allocation5 + $0x108] sm:$0xff] }
  0x43   :  { %v195_v56 = vld [vmem:[#allocation5 + $0x118] sm:$0xff]  ;;  %v461_v57 = vpack.c.bf16 %v190_v54, %v188_v53  ;;  %v192_v59 = vld [vmem:[#allocation5 + $0x100] sm:$0xff]  ;;  %v194_v60 = vld [vmem:[#allocation5 + $0x110] sm:$0xff] }
  0x44   :  { %442 = vmatpush1.bf16.msra.mxu1 %v441_v27  ;;  %v463_v58 = vpack.c.bf16 %v195_v56, %v193_v55  ;;  %v197_v61 = vld [vmem:[#allocation5 + $0x128] sm:$0xff]  ;;  %v199_v62 = vld [vmem:[#allocation5 + $0x138] sm:$0xff]  ;;  %v465_v63 = vpack.c.bf16 %v194_v60, %v192_v59  ;;  %v196_v1 = vld [vmem:[#allocation5 + $0x120] sm:$0xff]  ;;  %v604_v55 = vmov 0  }
  0x45   :  { %444 = vmatprep.subr.bf16.mxu1 %v443_v28  ;;  %v467_v0 = vpack.c.bf16 %v199_v62, %v197_v61  ;;  %v198_v2 = vld [vmem:[#allocation5 + $0x130] sm:$0xff]  ;;  %v201_v3 = vld [vmem:[#allocation5 + $0x148] sm:$0xff]  ;;  %v203_v4 = vld [vmem:[#allocation5 + $0x158] sm:$0xff]  ;;  %503 = vset.pattern.permute.xlu0 %v604_v55 }
  0x46   :  { %v469_v5 = vpack.c.bf16 %v198_v2, %v196_v1  ;;  %v471_v6 = vpack.c.bf16 %v203_v4, %v201_v3  ;;  %v200_v7 = vld [vmem:[#allocation5 + $0x140] sm:$0xff]  ;;  %v202_v8 = vld [vmem:[#allocation5 + $0x150] sm:$0xff]  ;;  %v205_v9 = vld [vmem:[#allocation5 + $0x168] sm:$0xff] }
  0x47   :  { %v207_v10 = vld [vmem:[#allocation5 + $0x178] sm:$0xff]  ;;  %v473_v11 = vpack.c.bf16 %v202_v8, %v200_v7  ;;  %v204_v13 = vld [vmem:[#allocation5 + $0x160] sm:$0xff]  ;;  %v206_v14 = vld [vmem:[#allocation5 + $0x170] sm:$0xff] }
  0x48   :  { %446 = vmatpush1.bf16.msra.mxu1 %v445_v33  ;;  %v475_v12 = vpack.c.bf16 %v207_v10, %v205_v9  ;;  %v209_v15 = vld [vmem:[#allocation5 + $0x188] sm:$0xff]  ;;  %v211_v16 = vld [vmem:[#allocation5 + $0x198] sm:$0xff]  ;;  %v477_v17 = vpack.c.bf16 %v206_v14, %v204_v13  ;;  %v208_v19 = vld [vmem:[#allocation5 + $0x180] sm:$0xff] }
  0x49   :  { %448 = vmatprep.subr.bf16.mxu1 %v447_v34  ;;  %v479_v18 = vpack.c.bf16 %v211_v16, %v209_v15  ;;  %v210_v20 = vld [vmem:[#allocation5 + $0x190] sm:$0xff]  ;;  %v213_v21 = vld [vmem:[#allocation5 + $0x1a8] sm:$0xff]  ;;  %v215_v22 = vld [vmem:[#allocation5 + $0x1b8] sm:$0xff] }
  0x4a   :  { %v481_v23 = vpack.c.bf16 %v210_v20, %v208_v19  ;;  %v483_v24 = vpack.c.bf16 %v215_v22, %v213_v21  ;;  %v212_v25 = vld [vmem:[#allocation5 + $0x1a0] sm:$0xff]  ;;  %v214_v26 = vld [vmem:[#allocation5 + $0x1b0] sm:$0xff]  ;;  %v217_v27 = vld [vmem:[#allocation5 + $0x1c8] sm:$0xff] }
  0x4b   :  { %v219_v28 = vld [vmem:[#allocation5 + $0x1d8] sm:$0xff]  ;;  %v485_v29 = vpack.c.bf16 %v214_v26, %v212_v25  ;;  %v216_v31 = vld [vmem:[#allocation5 + $0x1c0] sm:$0xff]  ;;  %v218_v32 = vld [vmem:[#allocation5 + $0x1d0] sm:$0xff] }
  0x4c   :  { %450 = vmatpush1.bf16.msra.mxu1 %v449_v39  ;;  %v487_v30 = vpack.c.bf16 %v219_v28, %v217_v27  ;;  %v489_v33 = vpack.c.bf16 %v218_v32, %v216_v31  ;;  %v221_v34 = vld [vmem:[#allocation5 + $0x1e8] sm:$0xff]  ;;  %v223_v35 = vld [vmem:[#allocation5 + $0x1f8] sm:$0xff]  ;;  %v220_v37 = vld [vmem:[#allocation5 + $0x1e0] sm:$0xff] }
  0x4d   :  { %452 = vmatprep.subr.bf16.mxu1 %v451_v40  ;;  %v491_v36 = vpack.c.bf16 %v223_v35, %v221_v34  ;;  %v222_v38 = vld [vmem:[#allocation5 + $0x1f0] sm:$0xff]  ;;  %v73_v40 = vlaneseq  ;;  %v71_v43 = vld [vmem:[%s718_s2] sm:$0x3]  ;;  %v310_v53 = vld [vmem:[%s721_s5 + $0x8] sm:$0x1f] }
  0x4e   :  { %v493_v39 = vpack.c.bf16 %v222_v38, %v220_v37  ;;  %381 = vmatprep.mubr.f32.mxu0 %v310_v53  ;;  %v311_v54 = vld [vmem:[%s722_s6] sm:$0x1f] }
  0x4f   :  { %v74_v41 = vshrl.u32 %v73_v40, 7  ;;  %314 = vperm.xlu0 %503, %v311_v54   ;;  %v224_v56 = vld [vmem:[#allocation7] sm:$0x3] }
  0x50   :  { %454 = vmatpush1.bf16.msra.mxu1 %v453_v45  ;;  %v309_v1 = vld [vmem:[%s721_s5] sm:$0x1f]  ;;  %s605_s5 = smov [#allocation8]  }
  0x51   :  { %456 = vmatprep.subr.bf16.mxu1 %v455_v46  ;;  %v75_v42 = vsub.s32 0, %v74_v41  ;;  %v79_v44 = vsub.s32 1, %v74_v41  ;;  %s416_s6 = sshll.u32 %s605_s5, 4  ;;  %s417_s6 = int_to_ptr.vmem [resolvable:$true] %s416_s6 }
  0x52   :  { %s570_s21 = scalar_lea.vmem %s417_s6, 32  ;;  %p575_p11 = scmp.lt.s32.totalorder %s417_s6, %s417_s6 }
  0x53   :  { %v76_v45 = vrot.slane %v71_v43, %v75_v42  ;;  %v80_v46 = vrot.slane %v71_v43, %v79_v44  ;;  %p571_p10 = scmp.ne.s32.totalorder %s417_s6, %s570_s21  ;;  %p576_p12 = scmp.lt.s32.totalorder %s570_s21, %s570_s21 }
  0x54   :  { %458 = vmatpush1.bf16.msra.mxu1 %v457_v51 }
  0x55   :  { %460 = vmatprep.subr.bf16.mxu1 %v459_v52  ;;  %p577_p13 = por %p576_p12, %p575_p11 }
  0x57   :  { %p578_p0 = pnand %p577_p13, %p571_p10 }
  0x58   :  { %462 = vmatpush1.bf16.msra.mxu1 %v461_v57  ;;  %v229_v57 = vrot.slane %v224_v56, %v75_v42 }
  0x59   :  { %464 = vmatprep.subr.bf16.mxu1 %v463_v58  ;;  %v233_v58 = vrot.slane %v224_v56, %v79_v44 }
  0x5c   :  { %466 = vmatpush1.bf16.msra.mxu1 %v465_v63 }
  0x5d   :  { %468 = vmatprep.subr.bf16.mxu1 %v467_v0 }
  0x60   :  { %470 = vmatpush1.bf16.msra.mxu1 %v469_v5 }
  0x61   :  { %472 = vmatprep.subr.bf16.mxu1 %v471_v6 }
  0x64   :  { %474 = vmatpush1.bf16.msra.mxu1 %v473_v11 }
  0x65   :  { %476 = vmatprep.subr.bf16.mxu1 %v475_v12 }
  0x68   :  { %478 = vmatpush1.bf16.msra.mxu1 %v477_v17 }
  0x69   :  { %480 = vmatprep.subr.bf16.mxu1 %v479_v18 }
  0x6c   :  { %482 = vmatpush1.bf16.msra.mxu1 %v481_v23 }
  0x6d   :  { %484 = vmatprep.subr.bf16.mxu1 %v483_v24 }
  0x70   :  { %486 = vmatpush1.bf16.msra.mxu1 %v485_v29 }
  0x71   :  { %488 = vmatprep.subr.bf16.mxu1 %v487_v30 }
  0x74   :  { %490 = vmatpush1.bf16.msra.mxu1 %v489_v33 }
  0x75   :  { %492 = vmatprep.subr.bf16.mxu1 %v491_v36 }
  0x78   :  { %494 = vmatpush1.bf16.msra.mxu1 %v493_v39 }
  0xce   :  { %v315_v2 = vpop.permute.xlu0 %314 }
 0x110   :  { %v153_v47 = vpop.f32.mrb[0].mxu0 }
 0x111   :  { %v154_v48 = vadd.f32 %v153_v47, %v76_v45  ;;  %v155_v49 = vpop.f32.mrb[1].mxu0 }
 0x112   :  { %v156_v50 = vadd.f32 %v155_v49, %v80_v46 }
 0x113   :  { %v158_v52 = vmax.f32 %v154_v48, 0.0 }
 0x114   :  { %v159_v51 = vmax.f32 %v156_v50, 0.0 }
 0x116   :  { %300 = vmatprep.mubr.f32.mxu1 %v159_v51 }
 0x117   :  { %301 = vmatmul.mubr.f32.vlgmr.msra.gmra.mrb[0].mxu1 %v158_v52 }
 0x1ea   :  { %v302_v59 = vpop.f32.mrb[0].mxu1 }
 0x1eb   :  { %v303_v60 = vadd.f32 %v302_v59, %v229_v57  ;;  %v304_v61 = vpop.f32.mrb[1].mxu1 }
 0x1ec   :  { %v305_v62 = vadd.f32 %v304_v61, %v233_v58 }
 0x1ed   :  { %v307_v0 = vmax.f32 %v303_v60, 0.0 }
 0x1ee   :  { %v308_v63 = vmax.f32 %v305_v62, 0.0 }
 0x1f0   :  { %317 = vmatprep.subr.mxu0 %v308_v63 }
 0x1f1   :  { %318 = vmatpush1.xpose.msra.mxu0 %v307_v0 }
 0x1f4   :  { %382 = vmatmul.mubr.f32.vlgmr.msra.gmra.mrb[2].mxu0 %v309_v1 }
 0x2c7   :  { %v383_v3 = vpop.f32.mrb[2].mxu0 }
 0x2c8   :  { %v384_v4 = vadd.f32 %v383_v3, %v315_v2  ;;  %v385_v5 = vpop.f32.mrb[3].mxu0 }
 0x2ca   :  { %v388_v6 = vsel %vm387_vm1, %v384_v4, 0.0 }
 0x2cb   :  { %v389_v7 = vrot.slane %v388_v6, 4 }
 0x2cd   :  { %v390_v8 = vadd.f32 %v389_v7, %v388_v6 }
 0x2cf   :  { %v391_v9 = vrot.slane %v390_v8, 2 }
 0x2d1   :  { %v392_v10 = vadd.f32 %v391_v9, %v390_v8 }
 0x2d3   :  { %v393_v11 = vrot.slane %v392_v10, 1 }
 0x2d5   :  { %v394_v12 = vadd.f32 %v393_v11, %v392_v10 }
 0x2d7   :  { %v395_v13 = vmul.f32 0.2, %v394_v12 }
 0x2d9   :  { %v396_v14 = vsub.f32 %v384_v4, %v395_v13 }
 0x2db   :  { %v397_v15 = vmul.f32 %v396_v14, %v396_v14 }
 0x2dd   :  { %v398_v16 = vsel %vm387_vm1, %v397_v15, 0.0 }
 0x2de   :  { %v399_v17 = vrot.slane %v398_v16, 4 }
 0x2e0   :  { %v400_v18 = vadd.f32 %v399_v17, %v398_v16 }
 0x2e2   :  { %v401_v19 = vrot.slane %v400_v18, 2 }
 0x2e4   :  { %v402_v20 = vadd.f32 %v401_v19, %v400_v18 }
 0x2e6   :  { %v403_v21 = vrot.slane %v402_v20, 1 }
 0x2e8   :  { %v404_v22 = vadd.f32 %v403_v21, %v402_v20 }
 0x2ea   :  { %v405_v23 = vmul.f32 0.25, %v404_v22 }
 0x2ec   :  { %v407_v24 = vsel %vm406_vm2, %v395_v13, %v405_v23 }
 0x2ed   :  { %409 = vst.msk [vmem:[#allocation8] sm:$0x3] %vm408_vm3, %v407_v24 }
 0x2ee   :  { %581 = shalt.err (!%p578_p0)
}
 0x2ef   :  { %s582_s24 = scalar_lea.hbm %s723_s7, 32 }
 0x2f0   :  { %p583_p1 = scmp.ne.s32.totalorder %s723_s7, %s582_s24  ;;  %p586_p2 = scmp.lt.u32.totalorder %s582_s24, %s723_s7 }
 0x2f2   :  { %p588_p3 = pnand %p586_p2, %p583_p1 }
 0x2f4   :  { %591 = shalt.err (!%p588_p3)
}
 0x2f5   :  { %419 = dma.vmem_to_hbm [thread:$0]  %s417_s6, 32, %s723_s7, [#allocation4]  }
 0x2f6   :  { %596 = dma.done.wait [#allocation4], 32  }
 0x2f7   :  { %597 = vsyncadd [#allocation4], 4294967264 }
 0x2f8   :  { %423 = vsyncpa [#allocation3], 1 }
 0x2f9   :  { %424 = vsyncpa [#allocation6], 1 }
 0x2fa   :  { %425 = vsyncpa [#allocation4], 1 }

</bundles_post_ra>
